<compile_context>
chip_gen: v6e
topology: v6e:2x2x1
jax: 0.10.0
libtpu: 0.0.40
codegen_flags: <defaults>
</compile_context>

<pallas_src>
import jax
import jax.numpy as jnp
from jax.experimental import pallas as pl
from jax.experimental.pallas import tpu as pltpu


def _round_up(a, m):
    return (a + m - 1) // m * m


def _make_kernel(inv_s, V, C, S, ts, mask_tail):
    """inv_s = 1/(T*H*W); V, C, S, ts static; mask_tail: S % ts != 0."""
    VC = V * C

    def kernel(x_ref, w_ref, b_ref, feat_ref, acc_ref):
        # x_ref:    (VC, ts)  streamed spatial tile of one batch element
        # w_ref:    (C, Dp)   backbone linear weight (lane-padded)
        # b_ref:    (1, Dp)   backbone linear bias   (lane-padded)
        # feat_ref: (V, Dp)   per-view features (output)
        # acc_ref:  (VC, 1)   f32 running sum over the spatial axis
        si = pl.program_id(1)

        @pl.when(si == 0)
        def _():
            acc_ref[...] = jnp.zeros_like(acc_ref)

        # Steady state: pure partial reduction over S (hidden under the x DMA).
        x = x_ref[...].astype(jnp.float32)
        if mask_tail:  # only generated when S % ts != 0 (static)
            lane = jax.lax.broadcasted_iota(jnp.int32, (VC, ts), 1)
            x = jnp.where(si * ts + lane < S, x, 0.0)
        acc_ref[...] += jnp.sum(x, axis=-1, keepdims=True)

        # Finalize: GAP scale, tiny C->Dp projection (VPU broadcast-MAC), bias.
        @pl.when(si == pl.num_programs(1) - 1)
        def _():
            gap = acc_ref[...] * inv_s          # (VC, 1) global-avg-pool
            w = w_ref[...]                      # (C, Dp)
            b_row = b_ref[...]                  # (1, Dp)
            for v in range(V):                  # unrolled; V, C tiny & static
                row = b_row
                for c in range(C):
                    i = v * C + c
                    row = row + gap[i:i + 1, :] * w[c:c + 1, :]
                feat_ref[v:v + 1, :] = row.astype(feat_ref.dtype)

    return kernel


def view_avg_aggregate(mvimages, w, b):
    """mvimages: (B, V, C, T, H, W) f32 (or bf16); w: (C, D); b: (1, D) / (D,).
       Returns (pooled (B, D), features (B, V, D)) matching the PyTorch forward.
    """
    B, V, C, T, H, W = mvimages.shape
    S = T * H * W
    VC = V * C
    D = w.shape[1]
    Dp = _round_up(D, 128)                   # lane-dense output stores

    # Free reshape (collapses contiguous dims); stream the input dtype as-is --
    # no wrapper-side cast/copy of the big activation tensor.
    x = mvimages.reshape(B, VC, S)
    itemsize = x.dtype.itemsize

    w_p = jnp.pad(w.astype(jnp.float32), ((0, 0), (0, Dp - D)))
    b_p = jnp.pad(jnp.asarray(b, jnp.float32).reshape(1, D),
                  ((0, 0), (0, Dp - D)))

    # --- generation-aware VMEM budget & tile selection (padded footprint) ---
    try:
        vmem_cap = int(pltpu.get_tpu_info().vmem_capacity_bytes)
    except Exception:                        # pragma: no cover
        vmem_cap = 64 << 20                  # conservative (v7x per-TC)
    vmem_cap = max(vmem_cap, 32 << 20)
    budget = vmem_cap * 3 // 4               # ~48 MiB v7x, ~96 MiB v5e/v6e

    sub_mult = (8 * 4) // itemsize           # sublane tile: 8 f32 / 16 bf16
    vc_pad = _round_up(VC, sub_mult)
    col_bytes = vc_pad * itemsize            # padded bytes per streamed column

    fixed = (2 * (_round_up(C, 8) * Dp * 4           # w  (double-buffered)
                  + 8 * Dp * 4                       # b
                  + _round_up(V, 8) * Dp * 4)        # feat output buffer
             + _round_up(VC, 8) * 128 * 4            # acc scratch
             + (2 << 20))                            # compiler headroom

    if S < 128:
        ts, mask_tail = S, False             # full (tiny) spatial axis at once
    else:
        per_buf = max((budget - fixed) // 2, 128 * col_bytes)
        if S % 128 != 0:
            per_buf //= 2                    # headroom for the mask/select chain
        ts = min(per_buf // col_bytes, _round_up(S, 128))
        ts = max(128, ts // 128 * 128)
        mask_tail = (S % ts) != 0
    n_s = pl.cdiv(S, ts)

    # Triple-buffer the x stream when tiles are plentiful and VMEM allows
    # (per-tile compute is trivial, the pipeline is pure DMA).
    if n_s >= 4 and 3 * ts * col_bytes + fixed <= budget:
        x_spec = pl.BlockSpec((pl.Squeezed(), VC, ts),
                              lambda bi, si: (bi, 0, si),
                              pipeline_mode=pl.Buffered(3))
    else:
        x_spec = pl.BlockSpec((pl.Squeezed(), VC, ts),
                              lambda bi, si: (bi, 0, si))

    kernel = _make_kernel(1.0 / float(S), V, C, S, ts, mask_tail)

    bytes_accessed = (x.size * itemsize + (w_p.size + b_p.size) * 4
                      + B * V * Dp * 4)
    flops = B * VC * S + 2 * B * V * C * Dp

    feat_p = pl.pallas_call(
        kernel,
        grid=(B, n_s),
        out_shape=jax.ShapeDtypeStruct((B, V, Dp), jnp.float32),
        in_specs=[
            x_spec,
            pl.BlockSpec((C, Dp), lambda bi, si: (0, 0)),
            pl.BlockSpec((1, Dp), lambda bi, si: (0, 0)),
        ],
        out_specs=pl.BlockSpec((pl.Squeezed(), V, Dp),
                               lambda bi, si: (bi, 0, 0)),
        scratch_shapes=[pltpu.VMEM((VC, 1), jnp.float32)],
        compiler_params=pltpu.CompilerParams(
            dimension_semantics=("parallel", "arbitrary"),
            vmem_limit_bytes=int(budget),
        ),
        cost_estimate=pl.CostEstimate(
            flops=flops, transcendentals=0, bytes_accessed=bytes_accessed),
    )(x, w_p, b_p)

    features = feat_p[:, :, :D]              # drop lane padding
    # agr_type='mean' view aggregation on the tiny (B, V, D) result
    # (lifting_net = identity).
    pooled = jnp.mean(features, axis=1)
    return pooled, features


def reference(mvimages, w, b):
    B, V, C, T, H, W = mvimages.shape
    gap = jnp.mean(mvimages.reshape(B * V, C, -1), axis=-1)
    feat = gap @ w + b.reshape(1, -1)
    feat = feat.reshape(B, V, -1)
    return jnp.mean(feat, axis=1), feat


if __name__ == "__main__":
    key = jax.random.PRNGKey(0)
    k_x, k_w, k_b = jax.random.split(key, 3)

    B, V, C, T, H, W = 2, 3, 4, 2, 8, 8      # small shapes consistent w/ forward
    D = 32                                    # backbone feature dim

    mvimages = jax.random.normal(k_x, (B, V, C, T, H, W), dtype=jnp.float32)
    w = (jax.random.normal(k_w, (C, D), dtype=jnp.float32)
         / jnp.sqrt(jnp.float32(C)))
    b = jax.random.normal(k_b, (1, D), dtype=jnp.float32) * 0.1

    pooled, features = view_avg_aggregate(mvimages, w, b)
    jax.block_until_ready((pooled, features))

    ref_pooled, ref_features = reference(mvimages, w, b)
    assert pooled.shape == (B, D) and features.shape == (B, V, D)
    # f32 streaming end-to-end -> tight tolerance.
    assert jnp.allclose(pooled, ref_pooled, atol=1e-5, rtol=1e-5)
    assert jnp.allclose(features, ref_features, atol=1e-5, rtol=1e-5)

    print("KERNEL_OK")
</pallas_src>

<mosaic_0001>
module attributes {stable_mosaic.version = 11 : i64} {
  func.func @kernel(%arg0: i32, %arg1: i32, %arg2: memref<1x12x128xf32, #tpu.memory_space<vmem>>, %arg3: memref<4x128xf32, #tpu.memory_space<vmem>>, %arg4: memref<1x128xf32, #tpu.memory_space<vmem>>, %arg5: memref<1x3x128xf32, #tpu.memory_space<vmem>>, %arg6: memref<12x1xf32, #tpu.memory_space<vmem>>) attributes {dimension_semantics = [#tpu.dimension_semantics<parallel>, #tpu.dimension_semantics<arbitrary>], iteration_bounds = array<i64: 2, 1>, scalar_prefetch = 0 : i64, scratch_operands = 1 : i64, tpu.core_type = #tpu.core_type<tc>, window_params = [{transform_indices = @transform_0, window_bounds = array<i64: 1, 12, 128>}, {pipeline_mode = #tpu.pipeline_mode<synchronous>, transform_indices = @transform_1, window_bounds = array<i64: 4, 128>}, {pipeline_mode = #tpu.pipeline_mode<synchronous>, transform_indices = @transform_2, window_bounds = array<i64: 1, 128>}, {transform_indices = @transform_3, window_bounds = array<i64: 1, 3, 128>}]} {
    %c0_i32 = arith.constant 0 : i32
    %0 = arith.cmpi eq, %arg1, %c0_i32 : i32
    %1 = arith.extui %0 : i1 to i32
    %c0_i32_0 = arith.constant 0 : i32
    %2 = arith.cmpi ne, %1, %c0_i32_0 : i32
    scf.if %2 {
      %cst_9 = arith.constant 0.000000e+00 : f32
      %13 = vector.broadcast %cst_9 : f32 to vector<12x1xf32>
      %c0_10 = arith.constant 0 : index
      %c0_11 = arith.constant 0 : index
      %14 = vector.load %arg6[%c0_10, %c0_11] : memref<12x1xf32, #tpu.memory_space<vmem>>, vector<12x1xf32>
      tpu.vector_store %arg6[%c0_10, %c0_11], %13 {strides = array<i32>} : memref<12x1xf32, #tpu.memory_space<vmem>>, vector<12x1xf32>,
    } else {
    }
    %c0 = arith.constant 0 : index
    %c0_1 = arith.constant 0 : index
    %c0_2 = arith.constant 0 : index
    %3 = vector.load %arg2[%c0, %c0_1, %c0_2] : memref<1x12x128xf32, #tpu.memory_space<vmem>>, vector<1x12x128xf32>
    %4 = vector.shape_cast %3 : vector<1x12x128xf32> to vector<12x128xf32>
    %c0_3 = arith.constant 0 : index
    %c0_4 = arith.constant 0 : index
    %5 = vector.load %arg6[%c0_3, %c0_4] : memref<12x1xf32, #tpu.memory_space<vmem>>, vector<12x1xf32>
    %cst = arith.constant dense<0.000000e+00> : vector<12xf32>
    %6 = vector.multi_reduction <add>, %4, %cst [1] : vector<12x128xf32> to vector<12xf32>
    %7 = vector.shape_cast %6 : vector<12xf32> to vector<12x1xf32>
    %8 = arith.addf %5, %7 : vector<12x1xf32>
    %c0_5 = arith.constant 0 : index
    %c0_6 = arith.constant 0 : index
    %9 = vector.load %arg6[%c0_5, %c0_6] : memref<12x1xf32, #tpu.memory_space<vmem>>, vector<12x1xf32>
    tpu.vector_store %arg6[%c0_5, %c0_6], %8 {strides = array<i32>} : memref<12x1xf32, #tpu.memory_space<vmem>>, vector<12x1xf32>,
    %c0_i32_7 = arith.constant 0 : i32
    %10 = arith.cmpi eq, %arg1, %c0_i32_7 : i32
    %11 = arith.extui %10 : i1 to i32
    %c0_i32_8 = arith.constant 0 : i32
    %12 = arith.cmpi ne, %11, %c0_i32_8 : i32
    scf.if %12 {
      %c0_9 = arith.constant 0 : index
      %c0_10 = arith.constant 0 : index
      %13 = vector.load %arg6[%c0_9, %c0_10] : memref<12x1xf32, #tpu.memory_space<vmem>>, vector<12x1xf32>
      %cst_11 = arith.constant 7.812500e-03 : f32
      %14 = vector.broadcast %cst_11 : f32 to vector<12x1xf32>
      %15 = arith.mulf %13, %14 : vector<12x1xf32>
      %c0_12 = arith.constant 0 : index
      %c0_13 = arith.constant 0 : index
      %16 = vector.load %arg3[%c0_12, %c0_13] : memref<4x128xf32, #tpu.memory_space<vmem>>, vector<4x128xf32>
      %c0_14 = arith.constant 0 : index
      %c0_15 = arith.constant 0 : index
      %17 = vector.load %arg4[%c0_14, %c0_15] : memref<1x128xf32, #tpu.memory_space<vmem>>, vector<1x128xf32>
      %18 = vector.extract_strided_slice %15 {offsets = [0, 0], sizes = [1, 1], strides = [1, 1]} : vector<12x1xf32> to vector<1x1xf32>
      %19 = vector.extract_strided_slice %16 {offsets = [0, 0], sizes = [1, 128], strides = [1, 1]} : vector<4x128xf32> to vector<1x128xf32>
      %20 = vector.broadcast %18 : vector<1x1xf32> to vector<1x128xf32>
      %21 = arith.mulf %20, %19 : vector<1x128xf32>
      %22 = arith.addf %17, %21 : vector<1x128xf32>
      %23 = vector.extract_strided_slice %15 {offsets = [1, 0], sizes = [1, 1], strides = [1, 1]} : vector<12x1xf32> to vector<1x1xf32>
      %24 = vector.extract_strided_slice %16 {offsets = [1, 0], sizes = [1, 128], strides = [1, 1]} : vector<4x128xf32> to vector<1x128xf32>
      %25 = vector.broadcast %23 : vector<1x1xf32> to vector<1x128xf32>
      %26 = arith.mulf %25, %24 : vector<1x128xf32>
      %27 = arith.addf %22, %26 : vector<1x128xf32>
      %28 = vector.extract_strided_slice %15 {offsets = [2, 0], sizes = [1, 1], strides = [1, 1]} : vector<12x1xf32> to vector<1x1xf32>
      %29 = vector.extract_strided_slice %16 {offsets = [2, 0], sizes = [1, 128], strides = [1, 1]} : vector<4x128xf32> to vector<1x128xf32>
      %30 = vector.broadcast %28 : vector<1x1xf32> to vector<1x128xf32>
      %31 = arith.mulf %30, %29 : vector<1x128xf32>
      %32 = arith.addf %27, %31 : vector<1x128xf32>
      %33 = vector.extract_strided_slice %15 {offsets = [3, 0], sizes = [1, 1], strides = [1, 1]} : vector<12x1xf32> to vector<1x1xf32>
      %34 = vector.extract_strided_slice %16 {offsets = [3, 0], sizes = [1, 128], strides = [1, 1]} : vector<4x128xf32> to vector<1x128xf32>
      %35 = vector.broadcast %33 : vector<1x1xf32> to vector<1x128xf32>
      %36 = arith.mulf %35, %34 : vector<1x128xf32>
      %37 = arith.addf %32, %36 : vector<1x128xf32>
      %c0_16 = arith.constant 0 : index
      %c0_17 = arith.constant 0 : index
      %c0_18 = arith.constant 0 : index
      %38 = vector.load %arg5[%c0_16, %c0_17, %c0_18] : memref<1x3x128xf32, #tpu.memory_space<vmem>>, vector<1x1x128xf32>
      %39 = vector.shape_cast %38 : vector<1x1x128xf32> to vector<1x128xf32>
      %40 = vector.shape_cast %37 : vector<1x128xf32> to vector<1x1x128xf32>
      tpu.vector_store %arg5[%c0_16, %c0_17, %c0_18], %40 {strides = array<i32>} : memref<1x3x128xf32, #tpu.memory_space<vmem>>, vector<1x1x128xf32>,
      %41 = vector.extract_strided_slice %15 {offsets = [4, 0], sizes = [1, 1], strides = [1, 1]} : vector<12x1xf32> to vector<1x1xf32>
      %42 = vector.extract_strided_slice %16 {offsets = [0, 0], sizes = [1, 128], strides = [1, 1]} : vector<4x128xf32> to vector<1x128xf32>
      %43 = vector.broadcast %41 : vector<1x1xf32> to vector<1x128xf32>
      %44 = arith.mulf %43, %42 : vector<1x128xf32>
      %45 = arith.addf %17, %44 : vector<1x128xf32>
      %46 = vector.extract_strided_slice %15 {offsets = [5, 0], sizes = [1, 1], strides = [1, 1]} : vector<12x1xf32> to vector<1x1xf32>
      %47 = vector.extract_strided_slice %16 {offsets = [1, 0], sizes = [1, 128], strides = [1, 1]} : vector<4x128xf32> to vector<1x128xf32>
      %48 = vector.broadcast %46 : vector<1x1xf32> to vector<1x128xf32>
      %49 = arith.mulf %48, %47 : vector<1x128xf32>
      %50 = arith.addf %45, %49 : vector<1x128xf32>
      %51 = vector.extract_strided_slice %15 {offsets = [6, 0], sizes = [1, 1], strides = [1, 1]} : vector<12x1xf32> to vector<1x1xf32>
      %52 = vector.extract_strided_slice %16 {offsets = [2, 0], sizes = [1, 128], strides = [1, 1]} : vector<4x128xf32> to vector<1x128xf32>
      %53 = vector.broadcast %51 : vector<1x1xf32> to vector<1x128xf32>
      %54 = arith.mulf %53, %52 : vector<1x128xf32>
      %55 = arith.addf %50, %54 : vector<1x128xf32>
      %56 = vector.extract_strided_slice %15 {offsets = [7, 0], sizes = [1, 1], strides = [1, 1]} : vector<12x1xf32> to vector<1x1xf32>
      %57 = vector.extract_strided_slice %16 {offsets = [3, 0], sizes = [1, 128], strides = [1, 1]} : vector<4x128xf32> to vector<1x128xf32>
      %58 = vector.broadcast %56 : vector<1x1xf32> to vector<1x128xf32>
      %59 = arith.mulf %58, %57 : vector<1x128xf32>
      %60 = arith.addf %55, %59 : vector<1x128xf32>
      %c0_19 = arith.constant 0 : index
      %c1 = arith.constant 1 : index
      %c0_20 = arith.constant 0 : index
      %61 = vector.load %arg5[%c0_19, %c1, %c0_20] : memref<1x3x128xf32, #tpu.memory_space<vmem>>, vector<1x1x128xf32>
      %62 = vector.shape_cast %61 : vector<1x1x128xf32> to vector<1x128xf32>
      %63 = vector.shape_cast %60 : vector<1x128xf32> to vector<1x1x128xf32>
      tpu.vector_store %arg5[%c0_19, %c1, %c0_20], %63 {strides = array<i32>} : memref<1x3x128xf32, #tpu.memory_space<vmem>>, vector<1x1x128xf32>,
      %64 = vector.extract_strided_slice %15 {offsets = [8, 0], sizes = [1, 1], strides = [1, 1]} : vector<12x1xf32> to vector<1x1xf32>
      %65 = vector.extract_strided_slice %16 {offsets = [0, 0], sizes = [1, 128], strides = [1, 1]} : vector<4x128xf32> to vector<1x128xf32>
      %66 = vector.broadcast %64 : vector<1x1xf32> to vector<1x128xf32>
      %67 = arith.mulf %66, %65 : vector<1x128xf32>
      %68 = arith.addf %17, %67 : vector<1x128xf32>
      %69 = vector.extract_strided_slice %15 {offsets = [9, 0], sizes = [1, 1], strides = [1, 1]} : vector<12x1xf32> to vector<1x1xf32>
      %70 = vector.extract_strided_slice %16 {offsets = [1, 0], sizes = [1, 128], strides = [1, 1]} : vector<4x128xf32> to vector<1x128xf32>
      %71 = vector.broadcast %69 : vector<1x1xf32> to vector<1x128xf32>
      %72 = arith.mulf %71, %70 : vector<1x128xf32>
      %73 = arith.addf %68, %72 : vector<1x128xf32>
      %74 = vector.extract_strided_slice %15 {offsets = [10, 0], sizes = [1, 1], strides = [1, 1]} : vector<12x1xf32> to vector<1x1xf32>
      %75 = vector.extract_strided_slice %16 {offsets = [2, 0], sizes = [1, 128], strides = [1, 1]} : vector<4x128xf32> to vector<1x128xf32>
      %76 = vector.broadcast %74 : vector<1x1xf32> to vector<1x128xf32>
      %77 = arith.mulf %76, %75 : vector<1x128xf32>
      %78 = arith.addf %73, %77 : vector<1x128xf32>
      %79 = vector.extract_strided_slice %15 {offsets = [11, 0], sizes = [1, 1], strides = [1, 1]} : vector<12x1xf32> to vector<1x1xf32>
      %80 = vector.extract_strided_slice %16 {offsets = [3, 0], sizes = [1, 128], strides = [1, 1]} : vector<4x128xf32> to vector<1x128xf32>
      %81 = vector.broadcast %79 : vector<1x1xf32> to vector<1x128xf32>
      %82 = arith.mulf %81, %80 : vector<1x128xf32>
      %83 = arith.addf %78, %82 : vector<1x128xf32>
      %c0_21 = arith.constant 0 : index
      %c2 = arith.constant 2 : index
      %c0_22 = arith.constant 0 : index
      %84 = vector.load %arg5[%c0_21, %c2, %c0_22] : memref<1x3x128xf32, #tpu.memory_space<vmem>>, vector<1x1x128xf32>
      %85 = vector.shape_cast %84 : vector<1x1x128xf32> to vector<1x128xf32>
      %86 = vector.shape_cast %83 : vector<1x128xf32> to vector<1x1x128xf32>
      tpu.vector_store %arg5[%c0_21, %c2, %c0_22], %86 {strides = array<i32>} : memref<1x3x128xf32, #tpu.memory_space<vmem>>, vector<1x1x128xf32>,
    } else {
    }
    return
  }
  func.func @transform_0(%arg0: i32, %arg1: i32) -> (i32, i32, i32) {
    %c0_i32 = arith.constant 0 : i32
    %c0_i32_0 = arith.constant 0 : i32
    return %arg0, %c0_i32, %arg1 : i32, i32, i32
  }
  func.func @transform_1(%arg0: i32, %arg1: i32) -> (i32, i32) {
    %c0_i32 = arith.constant 0 : i32
    %c0_i32_0 = arith.constant 0 : i32
    %c0_i32_1 = arith.constant 0 : i32
    return %c0_i32, %c0_i32_0 : i32, i32
  }
  func.func @transform_2(%arg0: i32, %arg1: i32) -> (i32, i32) {
    %c0_i32 = arith.constant 0 : i32
    %c0_i32_0 = arith.constant 0 : i32
    %c0_i32_1 = arith.constant 0 : i32
    return %c0_i32, %c0_i32_0 : i32, i32
  }
  func.func @transform_3(%arg0: i32, %arg1: i32) -> (i32, i32, i32) {
    %c0_i32 = arith.constant 0 : i32
    %c0_i32_0 = arith.constant 0 : i32
    %c0_i32_1 = arith.constant 0 : i32
    return %arg0, %c0_i32, %c0_i32_0 : i32, i32, i32
  }
}

</mosaic_0001>

<bundles_post_ra>
// kernel: tpu_custom_call.1
= control target key start
LH: loop header
LB: loop body
LE: loop exit
PB: predicated region body
PF: predicated region fallthrough
CT: control target
= control target key end

     0   :  { %s496_s12 = smov 0   ;;  %s498_s13 = smov 0   ;;  %s541_s0 = inlined_call_operand.vmem [shape: f32[2,12,128], index: 0, kind: input, shape index: {}]   ;;  %s542_s1 = inlined_call_operand.vmem [shape: f32[4,128], index: 1, kind: input, shape index: {}]   ;;  %s543_s2 = inlined_call_operand.vmem [shape: f32[1,128], index: 2, kind: input, shape index: {}]   ;;  %s544_s3 = inlined_call_operand.vmem [shape: f32[2,3,128], index: 3, kind: output, shape index: {}]  }
   0x1   :  { %s500_s14 = smov 0  }
   0x2 LB: > { %s25_s15 = sadd.s32 1, %s467_s13  ;;  %p413_p0 = scmp.ge.s32.totalorder %s471_s14, 1  ;;  %s471_s14 = sphi %s500_s14, %s13_s14   ;;  %s467_s13 = sphi %s498_s13, %s546_s13   ;;  %s463_s12 = sphi %s496_s12, %s545_s12  }
   0x3   : > { %p27_p1 = scmp.ge.s32.totalorder %s25_s15, 2  ;;  %p154_p2 = scmp.lt.s32.totalorder %s471_s14, 3 }
   0x5   : > { %s548_s15 = smov (%p27_p1, %s25_s15), 0  ;;  %p155_p3 = pnand %p413_p0, %p154_p2 }
   0x6   : > { %p180_p4 = scmp.lt.s32.totalorder (!%p155_p3), %s463_s12, 1 }
   0x7   : > { %158 = sbr.rel (%p155_p3) target bundleno = 309 (0x135), region = 32 }
   0xc   : > { %vm196_vm0 = vcmask 7168   ;;  %v473_v0 = vmov 0.0   ;;  %s550_s12 = smov (!%p180_p4, %s463_s12), 1  ;;  %vm206_vm1 = vcmask 1043456   ;;  %vm198_vm2 = vcmask 3072  }
   0xd   : > { %197 = vst.msk [vmem:[#allocation2] sm:$0xff] %vm196_vm0, %v473_v0  ;;  %s419_s16 = sshll.u32 %s550_s12, 4  ;;  %v474_v4 = vmov 0   ;;  %v475_v15 = vmov 1966171168   ;;  %v236_v17 = vlaneseq  ;;  %s416_s24 = sshll.u32 %s550_s12, 2 }
   0xe   : > { %s187_s19 = scalar_lea.vmem %s541_s0, %s419_s16  ;;  %199 = vst.msk [vmem:[#allocation2 + $0x8] sm:$0xf] %vm198_vm2, %v473_v0  ;;  %447 = vset.pattern.permute.xlu1 %v474_v4  ;;  %448 = vset.pattern.permute.xlu0 %v474_v4  ;;  %v234_v16 = vunpack.c.l.s4 %v475_v15  ;;  %v223_v18 = vld [vmem:[%s542_s1] sm:$0xf]  ;;  %s191_s27 = scalar_lea.vmem %s544_s3, %s416_s24 }
   0xf   : > { %v200_v1 = vld [vmem:[%s187_s19] sm:$0xff]  ;;  %v201_v2 = vld [vmem:[%s187_s19 + $0x8] sm:$0xf]  ;;  %v237_v20 = vshrl.u32 %v236_v17, 7  ;;  %v265_v21 = vrot.slane %v223_v18, 4 }
  0x10   : > { %204 = vadd.xlane.f32.xlu0 %v200_v1  ;;  %v207_v3 = vsel %vm206_vm1, %v201_v2, 0.0  ;;  %v235_v19 = vunpack.c.0.s8 %v234_v16  ;;  %v224_v28 = vld [vmem:[%s543_s2] sm:$0x1] }
  0x12   : > { %v238_v22 = vsub.s32 %v235_v19, %v237_v20 }
  0x14   : > { %208 = vadd.xlane.f32.xlu0 %v207_v3  ;;  %v202_v5 = vld [vmem:[#allocation2] sm:$0xff] }
  0x15   : > { %v203_v8 = vld [vmem:[#allocation2 + $0x8] sm:$0xf] }
  0x99   : > { %v205_v6 = vpop.xlane.xlu0 %204 }
  0x9a   : > { %v210_v7 = vadd.f32 %v205_v6, %v202_v5 }
  0x9c   : > { %213 = vst.msk [vmem:[#allocation2] sm:$0xff] %vm196_vm0, %v210_v7 }
  0x9d   : > { %v209_v9 = vpop.xlane.xlu0 %208 }
  0x9e   : > { %v211_v10 = vadd.f32 %v209_v9, %v203_v8 }
  0xa0   : > { %215 = vst.msk [vmem:[#allocation2 + $0x8] sm:$0xf] %vm198_vm2, %v211_v10 }
  0xa3   : > { %v219_v11 = vld [vmem:[#allocation2] sm:$0xff] }
  0xa4   : > { %v221_v12 = vmul.f32 0.0078125, %v219_v11 }
  0xa6   : > { %227 = vperm.xlu1 %447, %v221_v12  }
  0xa7   : > { %v220_v13 = vld [vmem:[#allocation2 + $0x8] sm:$0xf] }
  0xa8   : > { %v222_v14 = vmul.f32 0.0078125, %v220_v13 }
  0xaa   : > { %305 = vperm.xlu1 %447, %v222_v14  }
 0x121   : > { %v228_v23 = vpop.permute.xlu1 %227 }
 0x122   : > { %v230_v24 = vmul.f32 %v228_v23, %v223_v18  ;;  %v267_v25 = vmul.f32 %v265_v21, %v228_v23 }
 0x124   : > { %v239_v26 = vrot.slane %v230_v24, %v238_v22  ;;  %v269_v27 = vcombine.high %v267_v25, %v267_v25  ;;  %v231_v34 = vadd.f32 %v230_v24, %v224_v28 }
 0x125   : > { %v306_v29 = vpop.permute.xlu1 %305 }
 0x126   : > { %v240_v30 = vcombine.high %v239_v26, %v239_v26  ;;  %v247_v31 = vrot.slane %v239_v26, %v238_v22  ;;  %v276_v32 = vrot.slane %v269_v27, %v238_v22  ;;  %v308_v33 = vmul.f32 %v306_v29, %v223_v18 }
 0x128   : > { %v254_v35 = vrot.slane %v240_v30, %v238_v22  ;;  %v283_v36 = vrot.slane %v276_v32, %v238_v22  ;;  %v286_v37 = vcombine.high %v276_v32, %v276_v32  ;;  %v317_v38 = vrot.slane %v308_v33, %v238_v22 }
 0x129   : > { %v257_v40 = vcombine.high %v247_v31, %v247_v31  ;;  %v309_v49 = vadd.f32 %v308_v33, %v224_v28 }
 0x12a   : > { %v256_v39 = vadd.f32 %v254_v35, %v231_v34  ;;  %v285_v41 = vadd.f32 %v283_v36, %v224_v28  ;;  %v293_v42 = vrot.slane %v286_v37, %v238_v22  ;;  %v318_v43 = vcombine.high %v317_v38, %v317_v38 }
 0x12b   : > { %v325_v44 = vrot.slane %v317_v38, %v238_v22  ;;  %v260_v46 = vcombine.high %v254_v35, %v254_v35  ;;  %v296_v48 = vcombine.high %v283_v36, %v283_v36 }
 0x12c   : > { %v259_v45 = vadd.f32 %v257_v40, %v256_v39  ;;  %v295_v47 = vadd.f32 %v293_v42, %v285_v41  ;;  %v332_v50 = vrot.slane %v318_v43, %v238_v22  ;;  %v299_v53 = vcombine.high %v293_v42, %v293_v42 }
 0x12d   : > { %v335_v55 = vcombine.high %v325_v44, %v325_v44 }
 0x12e   : > { %v262_v51 = vadd.f32 %v260_v46, %v259_v45  ;;  %v298_v52 = vadd.f32 %v296_v48, %v295_v47  ;;  %v334_v54 = vadd.f32 %v332_v50, %v309_v49  ;;  %v338_v58 = vcombine.high %v332_v50, %v332_v50 }
 0x130   : > { %263 = vst [vmem:[%s191_s27] sm:$0x1] %v262_v51  ;;  %v301_v56 = vadd.f32 %v299_v53, %v298_v52  ;;  %v337_v57 = vadd.f32 %v335_v55, %v334_v54 }
 0x132   : > { %302 = vst [vmem:[%s191_s27 + $0x1] sm:$0x1] %v301_v56  ;;  %v340_v59 = vadd.f32 %v338_v58, %v337_v57 }
 0x134   : > { %341 = vst [vmem:[%s191_s27 + $0x2] sm:$0x1] %v340_v59 }
 0x135 PF: > { %s13_s14 = sadd.s32 1, %s471_s14   ;;  %s545_s12 = smov %s467_s13 }
 0x136   : > { %p10_p5 = scmp.ge.s32.totalorder %s13_s14, 4   ;;  %s546_s13 = smov %s548_s15 }
 0x138   :  { %12 = sbr.rel (!%p10_p5) target bundleno = 2 (0x2), region = 70 }

</bundles_post_ra>
